<compile_context>
chip_gen: v7x
topology: tpu7x:2x2x1
jax: 0.10.0
libtpu: 0.0.40
codegen_flags: <defaults>
</compile_context>

<pallas_src>
import functools

import jax
import jax.numpy as jnp
from jax.experimental import pallas as pl
from jax.experimental.pallas import tpu as pltpu

_INV_SQRT2 = 0.7071067811865476


def _round_up(x, m):
    return ((x + m - 1) // m) * m


def _bert_lm_head_kernel(x_ref, wd_ref, bd_ref, gamma_ref, beta_ref,
                         wdec_ref, vbias_ref, out_ref, h_scratch):
    """Grid = (m-tiles [parallel], vocab-tiles [arbitrary, innermost]).

    dense + GELU + LayerNorm are computed once per m-tile (at v == 0), cached
    as bf16 in VMEM scratch, and reused for every vocab tile of the decoder
    matmul of that m-tile.
    """
    v = pl.program_id(1)

    @pl.when(v == 0)
    def _():
        # dense: bf16 operands, f32 accumulation on the MXU
        h = jnp.dot(x_ref[...], wd_ref[...],
                    preferred_element_type=jnp.float32) + bd_ref[...]
        # exact (erf) GELU, matching torch.nn.functional.gelu default (f32 math)
        h = 0.5 * h * (1.0 + jax.lax.erf(h * _INV_SQRT2))
        # LayerNorm over last dim, eps=1e-12, affine (gamma, beta), f32 math
        mu = jnp.mean(h, axis=-1, keepdims=True)
        var = jnp.mean((h - mu) * (h - mu), axis=-1, keepdims=True)
        h = (h - mu) * jax.lax.rsqrt(var + 1e-12)
        h = h * gamma_ref[...] + beta_ref[...]
        h_scratch[...] = h.astype(h_scratch.dtype)

    # decoder matmul for this (m-tile, vocab-tile) + vocab bias (f32 accumulate)
    out_ref[...] = (
        jnp.dot(h_scratch[...], wdec_ref[...],
                preferred_element_type=jnp.float32) + vbias_ref[...]
    ).astype(out_ref.dtype)


def prepare_bert_lm_head_params(w_dense, b_dense, gamma, beta,
                                w_decoder, vocab_bias, *, tv=1024):
    """One-time (load-time) parameter prep: bf16 casts + vocab padding.

    Doing this outside the per-call path avoids re-reading ~125 MiB of f32
    decoder weights and re-writing the padded bf16 copy on every forward.
    """
    H, V = w_decoder.shape
    # vocab tile: multiple of 256 for the 256-wide v6e/v7x MXU (>= 128 lane req)
    tv_eff = int(min(tv, _round_up(V, 256)))
    v_pad = int(_round_up(V, tv_eff))

    wdec = w_decoder.astype(jnp.bfloat16)
    vbias = vocab_bias.astype(jnp.float32)
    if v_pad != V:
        wdec = jnp.pad(wdec, ((0, 0), (0, v_pad - V)))
        vbias = jnp.pad(vbias, (0, v_pad - V))

    return {
        "w_dense": w_dense.astype(jnp.bfloat16),
        "b_dense": b_dense.reshape(1, H).astype(jnp.float32),
        "gamma": gamma.reshape(1, H).astype(jnp.float32),
        "beta": beta.reshape(1, H).astype(jnp.float32),
        "w_decoder": wdec,
        "vocab_bias": vbias.reshape(1, v_pad),
        "vocab_size": int(V),
        "padded_vocab_size": v_pad,
        "tv": tv_eff,
    }


def _vmem_limit_bytes(tm, tv, H, out_bytes):
    """Actual tile footprint (+~50% headroom), capped under v7x's 64 MiB/TC."""
    dbl = 2  # pipeline double-buffering
    total = (
        tm * H * 2 * dbl            # x m-tile (bf16)
        + H * H * 2 * dbl           # dense weight (bf16, grid-invariant)
        + 3 * H * 4 * dbl           # dense bias + LN gamma/beta (f32)
        + H * tv * 2 * dbl          # decoder tile (bf16)
        + tv * 4 * dbl              # vocab bias tile (f32)
        + tm * tv * out_bytes * dbl  # output tile
        + tm * H * 2                # h scratch (bf16, single buffer)
    )
    return int(min(max(total * 3 // 2, 32 * 1024 * 1024), 56 * 1024 * 1024))


@functools.partial(
    jax.jit,
    static_argnames=("vocab_size", "padded_vocab_size", "tm", "tv",
                     "out_dtype", "trim_vocab"))
def _bert_lm_head_impl(x, wd, bd, gamma, beta, wdec, vbias, *,
                       vocab_size, padded_vocab_size, tm, tv,
                       out_dtype, trim_vocab):
    B, S, H = x.shape
    M = B * S
    v_pad = padded_vocab_size

    # ---- m-tile selection -------------------------------------------------
    # Multiple of 16 (bf16 packs 16 rows per sublane group). Large enough to
    # amortize the ~0.35 us/grid-step overhead and cut decoder-weight HBM
    # re-reads; shrunk for small token counts.
    m16 = _round_up(M, 16)
    tm_eff = min(tm, m16)
    # megacore guard: give both v7x TensorCores at least one m-tile when there
    # is enough work to split.
    if m16 // tm_eff < 2 and m16 >= 32:
        tm_eff = _round_up((m16 + 1) // 2, 16)
    m_pad = _round_up(M, tm_eff)

    x_flat = x.reshape(M, H).astype(jnp.bfloat16)
    if m_pad != M:
        x_flat = jnp.pad(x_flat, ((0, m_pad - M), (0, 0)))

    grid = (m_pad // tm_eff, v_pad // tv)
    out_bytes = jnp.dtype(out_dtype).itemsize

    cost = pl.CostEstimate(
        flops=2 * m_pad * H * (H + v_pad),
        transcendentals=m_pad * H,  # erf in the GELU
        bytes_accessed=(m_pad * H * 2                       # x (bf16)
                        + H * H * 2                         # dense weight
                        + H * v_pad * 2 * (m_pad // tm_eff)  # decoder re-reads
                        + m_pad * v_pad * out_bytes),       # logits writeback
    )

    # NOTE: the grid-invariant inputs (w_dense, biases, LN params) could use
    # pipeline_mode=pl.Buffered(1) to drop one resident buffer (~2 MiB at
    # H=1024); left at the default to keep the lowering conservative.
    out = pl.pallas_call(
        _bert_lm_head_kernel,
        out_shape=jax.ShapeDtypeStruct((m_pad, v_pad), out_dtype),
        grid_spec=pltpu.PrefetchScalarGridSpec(
            num_scalar_prefetch=0,
            grid=grid,
            in_specs=[
                pl.BlockSpec((tm_eff, H), lambda i, j: (i, 0)),   # x m-tile
                pl.BlockSpec((H, H), lambda i, j: (0, 0)),        # dense weight
                pl.BlockSpec((1, H), lambda i, j: (0, 0)),        # dense bias
                pl.BlockSpec((1, H), lambda i, j: (0, 0)),        # LN gamma
                pl.BlockSpec((1, H), lambda i, j: (0, 0)),        # LN beta
                pl.BlockSpec((H, tv), lambda i, j: (0, j)),       # decoder tile
                pl.BlockSpec((1, tv), lambda i, j: (0, j)),       # vocab bias
            ],
            out_specs=pl.BlockSpec((tm_eff, tv), lambda i, j: (i, j)),
            scratch_shapes=[pltpu.VMEM((tm_eff, H), jnp.bfloat16)],
        ),
        compiler_params=pltpu.CompilerParams(
            dimension_semantics=("parallel", "arbitrary"),
            vmem_limit_bytes=_vmem_limit_bytes(tm_eff, tv, H, out_bytes),
        ),
        cost_estimate=cost,
    )(x_flat, wd, bd, gamma, beta, wdec, vbias)

    if m_pad != M:
        out = out[:M]
    if trim_vocab and v_pad != vocab_size:
        # TODO(synk): for real 30k vocabs, keep the vocab padded end-to-end and
        # mask padded logits in the loss to avoid this extra [M, V] copy.
        out = out[:, :vocab_size]
    return out.reshape(B, S, -1)


def bert_lm_head(hidden_states, params, *, tm=1024,
                 out_dtype=jnp.bfloat16, trim_vocab=True):
    """hidden_states: [B, S, H] -> logits [B, S, V] (bf16 by default)."""
    return _bert_lm_head_impl(
        hidden_states,
        params["w_dense"], params["b_dense"], params["gamma"], params["beta"],
        params["w_decoder"], params["vocab_bias"],
        vocab_size=params["vocab_size"],
        padded_vocab_size=params["padded_vocab_size"],
        tm=tm, tv=params["tv"], out_dtype=out_dtype, trim_vocab=trim_vocab)


def _reference(hidden_states, w_dense, b_dense, gamma, beta, w_decoder, vocab_bias):
    h = hidden_states @ w_dense + b_dense
    h = 0.5 * h * (1.0 + jax.lax.erf(h * _INV_SQRT2))
    mu = jnp.mean(h, axis=-1, keepdims=True)
    var = jnp.mean((h - mu) ** 2, axis=-1, keepdims=True)
    h = (h - mu) * jax.lax.rsqrt(var + 1e-12)
    h = h * gamma + beta
    return h @ w_decoder + vocab_bias


if __name__ == "__main__":
    # Small, kernel-friendly shapes consistent with the module's forward.
    batch, seq, hidden, vocab = 2, 8, 128, 256

    key = jax.random.PRNGKey(0)
    k_x, k_wd, k_bd, k_wdec, k_bias = jax.random.split(key, 5)

    hidden_states = jax.random.normal(k_x, (batch, seq, hidden), jnp.float32)

    # Deterministic synthetic parameters (shapes from __init__).
    w_dense = jax.random.normal(k_wd, (hidden, hidden), jnp.float32) * 0.02
    b_dense = jax.random.normal(k_bd, (hidden,), jnp.float32) * 0.02
    gamma = jnp.ones((hidden,), jnp.float32)           # BertLayerNorm weight
    beta = jnp.zeros((hidden,), jnp.float32)           # BertLayerNorm bias
    w_decoder = jax.random.normal(k_wdec, (hidden, vocab), jnp.float32) * 0.02
    vocab_bias = jax.random.normal(k_bias, (vocab,), jnp.float32) * 0.02

    # One-time parameter prep (bf16 cast + vocab padding) outside the call path.
    params = prepare_bert_lm_head_params(w_dense, b_dense, gamma, beta,
                                         w_decoder, vocab_bias)

    logits = bert_lm_head(hidden_states, params)
    jax.block_until_ready(logits)

    ref = _reference(hidden_states, w_dense, b_dense, gamma, beta,
                     w_decoder, vocab_bias)
    assert logits.shape == (batch, seq, vocab)
    # bf16 MXU operands + bf16 logits with f32 accumulation: loose tolerance
    # vs. the f32 reference (intentional, per the bf16-compute contract).
    assert jnp.allclose(logits.astype(jnp.float32), ref, atol=2e-2, rtol=2e-2)

    print("KERNEL_OK")
</pallas_src>

<mosaic_0001>
module attributes {stable_mosaic.version = 11 : i64} {
  func.func @_bert_lm_head_kernel(%arg0: i32, %arg1: i32, %arg2: memref<16x128xbf16, #tpu.memory_space<vmem>>, %arg3: memref<128x128xbf16, #tpu.memory_space<vmem>>, %arg4: memref<1x128xf32, #tpu.memory_space<vmem>>, %arg5: memref<1x128xf32, #tpu.memory_space<vmem>>, %arg6: memref<1x128xf32, #tpu.memory_space<vmem>>, %arg7: memref<128x256xbf16, #tpu.memory_space<vmem>>, %arg8: memref<1x256xf32, #tpu.memory_space<vmem>>, %arg9: memref<16x256xbf16, #tpu.memory_space<vmem>>, %arg10: memref<16x128xbf16, #tpu.memory_space<vmem>>) attributes {dimension_semantics = [#tpu.dimension_semantics<parallel>, #tpu.dimension_semantics<arbitrary>], iteration_bounds = array<i64: 1, 1>, scalar_prefetch = 0 : i64, scratch_operands = 1 : i64, tpu.core_type = #tpu.core_type<tc>, window_params = [{transform_indices = @transform_0, window_bounds = array<i64: 16, 128>}, {pipeline_mode = #tpu.pipeline_mode<synchronous>, transform_indices = @transform_1, window_bounds = array<i64: 128, 128>}, {pipeline_mode = #tpu.pipeline_mode<synchronous>, transform_indices = @transform_2, window_bounds = array<i64: 1, 128>}, {pipeline_mode = #tpu.pipeline_mode<synchronous>, transform_indices = @transform_3, window_bounds = array<i64: 1, 128>}, {pipeline_mode = #tpu.pipeline_mode<synchronous>, transform_indices = @transform_4, window_bounds = array<i64: 1, 128>}, {transform_indices = @transform_5, window_bounds = array<i64: 128, 256>}, {transform_indices = @transform_6, window_bounds = array<i64: 1, 256>}, {transform_indices = @transform_7, window_bounds = array<i64: 16, 256>}]} {
    %c0_i32 = arith.constant 0 : i32
    %0 = arith.cmpi eq, %arg1, %c0_i32 : i32
    %1 = arith.extui %0 : i1 to i32
    %c0_i32_0 = arith.constant 0 : i32
    %2 = arith.cmpi ne, %1, %c0_i32_0 : i32
    scf.if %2 {
      %c0_8 = arith.constant 0 : index
      %c0_9 = arith.constant 0 : index
      %11 = vector.load %arg2[%c0_8, %c0_9] : memref<16x128xbf16, #tpu.memory_space<vmem>>, vector<16x128xbf16>
      %c0_10 = arith.constant 0 : index
      %c0_11 = arith.constant 0 : index
      %12 = vector.load %arg3[%c0_10, %c0_11] : memref<128x128xbf16, #tpu.memory_space<vmem>>, vector<128x128xbf16>
      %cst_12 = arith.constant dense<0.000000e+00> : vector<16x128xf32>
      %13 = tpu.matmul %11, %12, %cst_12 {dimension_numbers = #tpu.dot_dimension_numbers<[1], [0], [0], [1], [0, 0, 1, 1], [], []>} : vector<16x128xbf16>, vector<128x128xbf16>, vector<16x128xf32> -> vector<16x128xf32>
      %c0_13 = arith.constant 0 : index
      %c0_14 = arith.constant 0 : index
      %14 = vector.load %arg4[%c0_13, %c0_14] : memref<1x128xf32, #tpu.memory_space<vmem>>, vector<1x128xf32>
      %15 = vector.broadcast %14 : vector<1x128xf32> to vector<16x128xf32>
      %16 = arith.addf %13, %15 : vector<16x128xf32>
      %cst_15 = arith.constant 5.000000e-01 : f32
      %17 = vector.broadcast %cst_15 : f32 to vector<16x128xf32>
      %18 = arith.mulf %17, %16 : vector<16x128xf32>
      %cst_16 = arith.constant 0.707106769 : f32
      %19 = vector.broadcast %cst_16 : f32 to vector<16x128xf32>
      %20 = arith.mulf %16, %19 : vector<16x128xf32>
      %21 = math.erf %20 : vector<16x128xf32>
      %cst_17 = arith.constant 1.000000e+00 : f32
      %22 = vector.broadcast %cst_17 : f32 to vector<16x128xf32>
      %23 = arith.addf %22, %21 : vector<16x128xf32>
      %24 = arith.mulf %18, %23 : vector<16x128xf32>
      %cst_18 = arith.constant dense<0.000000e+00> : vector<16xf32>
      %25 = vector.multi_reduction <add>, %24, %cst_18 [1] : vector<16x128xf32> to vector<16xf32>
      %26 = vector.shape_cast %25 : vector<16xf32> to vector<16x1xf32>
      %cst_19 = arith.constant 1.280000e+02 : f32
      %27 = vector.broadcast %cst_19 : f32 to vector<16x1xf32>
      %28 = arith.divf %26, %27 : vector<16x1xf32>
      %29 = vector.broadcast %28 : vector<16x1xf32> to vector<16x128xf32>
      %30 = arith.subf %24, %29 : vector<16x128xf32>
      %31 = vector.broadcast %28 : vector<16x1xf32> to vector<16x128xf32>
      %32 = arith.subf %24, %31 : vector<16x128xf32>
      %33 = arith.mulf %30, %32 : vector<16x128xf32>
      %cst_20 = arith.constant dense<0.000000e+00> : vector<16xf32>
      %34 = vector.multi_reduction <add>, %33, %cst_20 [1] : vector<16x128xf32> to vector<16xf32>
      %35 = vector.shape_cast %34 : vector<16xf32> to vector<16x1xf32>
      %cst_21 = arith.constant 1.280000e+02 : f32
      %36 = vector.broadcast %cst_21 : f32 to vector<16x1xf32>
      %37 = arith.divf %35, %36 : vector<16x1xf32>
      %38 = vector.broadcast %28 : vector<16x1xf32> to vector<16x128xf32>
      %39 = arith.subf %24, %38 : vector<16x128xf32>
      %cst_22 = arith.constant 9.99999996E-13 : f32
      %40 = vector.broadcast %cst_22 : f32 to vector<16x1xf32>
      %41 = arith.addf %37, %40 : vector<16x1xf32>
      %42 = math.rsqrt %41 : vector<16x1xf32>
      %43 = vector.broadcast %42 : vector<16x1xf32> to vector<16x128xf32>
      %44 = arith.mulf %39, %43 : vector<16x128xf32>
      %c0_23 = arith.constant 0 : index
      %c0_24 = arith.constant 0 : index
      %45 = vector.load %arg5[%c0_23, %c0_24] : memref<1x128xf32, #tpu.memory_space<vmem>>, vector<1x128xf32>
      %46 = vector.broadcast %45 : vector<1x128xf32> to vector<16x128xf32>
      %47 = arith.mulf %44, %46 : vector<16x128xf32>
      %c0_25 = arith.constant 0 : index
      %c0_26 = arith.constant 0 : index
      %48 = vector.load %arg6[%c0_25, %c0_26] : memref<1x128xf32, #tpu.memory_space<vmem>>, vector<1x128xf32>
      %49 = vector.broadcast %48 : vector<1x128xf32> to vector<16x128xf32>
      %50 = arith.addf %47, %49 : vector<16x128xf32>
      %51 = arith.truncf %50 : vector<16x128xf32> to vector<16x128xbf16>
      %c0_27 = arith.constant 0 : index
      %c0_28 = arith.constant 0 : index
      %52 = vector.load %arg10[%c0_27, %c0_28] : memref<16x128xbf16, #tpu.memory_space<vmem>>, vector<16x128xbf16>
      tpu.vector_store %arg10[%c0_27, %c0_28], %51 {strides = array<i32>} : memref<16x128xbf16, #tpu.memory_space<vmem>>, vector<16x128xbf16>,
    } else {
    }
    %c0 = arith.constant 0 : index
    %c0_1 = arith.constant 0 : index
    %3 = vector.load %arg10[%c0, %c0_1] : memref<16x128xbf16, #tpu.memory_space<vmem>>, vector<16x128xbf16>
    %c0_2 = arith.constant 0 : index
    %c0_3 = arith.constant 0 : index
    %4 = vector.load %arg7[%c0_2, %c0_3] : memref<128x256xbf16, #tpu.memory_space<vmem>>, vector<128x256xbf16>
    %cst = arith.constant dense<0.000000e+00> : vector<16x256xf32>
    %5 = tpu.matmul %3, %4, %cst {dimension_numbers = #tpu.dot_dimension_numbers<[1], [0], [0], [1], [0, 0, 1, 1], [], []>} : vector<16x128xbf16>, vector<128x256xbf16>, vector<16x256xf32> -> vector<16x256xf32>
    %c0_4 = arith.constant 0 : index
    %c0_5 = arith.constant 0 : index
    %6 = vector.load %arg8[%c0_4, %c0_5] : memref<1x256xf32, #tpu.memory_space<vmem>>, vector<1x256xf32>
    %7 = vector.broadcast %6 : vector<1x256xf32> to vector<16x256xf32>
    %8 = arith.addf %5, %7 : vector<16x256xf32>
    %9 = arith.truncf %8 : vector<16x256xf32> to vector<16x256xbf16>
    %c0_6 = arith.constant 0 : index
    %c0_7 = arith.constant 0 : index
    %10 = vector.load %arg9[%c0_6, %c0_7] : memref<16x256xbf16, #tpu.memory_space<vmem>>, vector<16x256xbf16>
    tpu.vector_store %arg9[%c0_6, %c0_7], %9 {strides = array<i32>} : memref<16x256xbf16, #tpu.memory_space<vmem>>, vector<16x256xbf16>,
    return
  }
  func.func @transform_0(%arg0: i32, %arg1: i32) -> (i32, i32) {
    %c0_i32 = arith.constant 0 : i32
    %c0_i32_0 = arith.constant 0 : i32
    return %arg0, %c0_i32 : i32, i32
  }
  func.func @transform_1(%arg0: i32, %arg1: i32) -> (i32, i32) {
    %c0_i32 = arith.constant 0 : i32
    %c0_i32_0 = arith.constant 0 : i32
    %c0_i32_1 = arith.constant 0 : i32
    return %c0_i32, %c0_i32_0 : i32, i32
  }
  func.func @transform_2(%arg0: i32, %arg1: i32) -> (i32, i32) {
    %c0_i32 = arith.constant 0 : i32
    %c0_i32_0 = arith.constant 0 : i32
    %c0_i32_1 = arith.constant 0 : i32
    return %c0_i32, %c0_i32_0 : i32, i32
  }
  func.func @transform_3(%arg0: i32, %arg1: i32) -> (i32, i32) {
    %c0_i32 = arith.constant 0 : i32
    %c0_i32_0 = arith.constant 0 : i32
    %c0_i32_1 = arith.constant 0 : i32
    return %c0_i32, %c0_i32_0 : i32, i32
  }
  func.func @transform_4(%arg0: i32, %arg1: i32) -> (i32, i32) {
    %c0_i32 = arith.constant 0 : i32
    %c0_i32_0 = arith.constant 0 : i32
    %c0_i32_1 = arith.constant 0 : i32
    return %c0_i32, %c0_i32_0 : i32, i32
  }
  func.func @transform_5(%arg0: i32, %arg1: i32) -> (i32, i32) {
    %c0_i32 = arith.constant 0 : i32
    %c0_i32_0 = arith.constant 0 : i32
    return %c0_i32, %arg1 : i32, i32
  }
  func.func @transform_6(%arg0: i32, %arg1: i32) -> (i32, i32) {
    %c0_i32 = arith.constant 0 : i32
    %c0_i32_0 = arith.constant 0 : i32
    return %c0_i32, %arg1 : i32, i32
  }
  func.func @transform_7(%arg0: i32, %arg1: i32) -> (i32, i32) {
    %c0_i32 = arith.constant 0 : i32
    return %arg0, %arg1 : i32, i32
  }
}

</mosaic_0001>

<bundles_post_ra>
// kernel: _bert_lm_head_impl.1
= control target key start
LH: loop header
LB: loop body
LE: loop exit
PB: predicated region body
PF: predicated region fallthrough
CT: control target
= control target key end

     0   :  { %12 = vsyncpa [#allocation4], 0  ;;  %s708_s0 = inlined_call_operand.vmem [shape: bf16[16,128], index: 0, kind: input, shape index: {}]   ;;  %s709_s1 = inlined_call_operand.hbm [shape: bf16[128,128], index: 1, kind: input, shape index: {}]   ;;  %s710_s2 = inlined_call_operand.vmem [shape: f32[1,128], index: 2, kind: input, shape index: {}]   ;;  %s711_s3 = inlined_call_operand.vmem [shape: f32[1,128], index: 3, kind: input, shape index: {}]   ;;  %s712_s4 = inlined_call_operand.vmem [shape: f32[1,128], index: 4, kind: input, shape index: {}]   ;;  %s713_s5 = inlined_call_operand.hbm [shape: bf16[128,256], index: 5, kind: input, shape index: {}]   ;;  %s714_s6 = inlined_call_operand.vmem [shape: f32[1,256], index: 6, kind: input, shape index: {}]   ;;  %s715_s7 = inlined_call_operand.hbm [shape: bf16[16,256], index: 7, kind: output, shape index: {}]  }
   0x1   :  { %13 = vsyncpa [#allocation7], 0 }
   0x2   :  { %14 = vsyncpa [#allocation5], 0  ;;  %s601_s24 = smov [#allocation3]   ;;  %s529_s28 = scalar_lea.hbm %s709_s1, 1024 }
   0x3   :  { %s22_s25 = sshll.u32 %s601_s24, 4  ;;  %p530_p0 = scmp.ne.s32.totalorder %s709_s1, %s529_s28  ;;  %s23_s25 = int_to_ptr.vmem [resolvable:$true] %s22_s25 }
   0x4   :  { %p533_p1 = scmp.lt.u32.totalorder %s529_s28, %s709_s1 }
   0x6   :  { %p535_p2 = pnand %p533_p1, %p530_p0 }
   0x8   :  { %538 = shalt.err (!%p535_p2)
}
   0x9   :  { %s539_s10 = scalar_lea.vmem %s23_s25, 1024  ;;  %p544_p4 = scmp.lt.s32.totalorder %s23_s25, %s23_s25 }
   0xa   :  { %p540_p3 = scmp.ne.s32.totalorder %s23_s25, %s539_s10  ;;  %p545_p5 = scmp.lt.s32.totalorder %s539_s10, %s539_s10 }
   0xc   :  { %p546_p6 = por %p545_p5, %p544_p4 }
   0xe   :  { %p547_p7 = pnand %p546_p6, %p540_p3 }
  0x10   :  { %550 = shalt.err (!%p547_p7)
}
  0x11   :  { %s602_s11 = smov 64   ;;  %s603_s12 = smov 4  }
  0x12   :  { %28 = dma.hbm_to_vmem [thread:$0]  %s709_s1, 1024, %s23_s25, [#allocation4], %s602_s11, %s602_s11, %s603_s12  }
  0x13   :  { %s604_s15 = smov [#allocation6]   ;;  %s551_s19 = scalar_lea.hbm %s713_s5, 2048 }
  0x14   :  { %s40_s16 = sshll.u32 %s604_s15, 4  ;;  %p552_p8 = scmp.ne.s32.totalorder %s713_s5, %s551_s19  ;;  %s41_s16 = int_to_ptr.vmem [resolvable:$true] %s40_s16 }
  0x15   :  { %p555_p9 = scmp.lt.u32.totalorder %s551_s19, %s713_s5 }
  0x17   :  { %p557_p10 = pnand %p555_p9, %p552_p8 }
  0x19   :  { %560 = shalt.err (!%p557_p10)
}
  0x1a   :  { %s561_s24 = scalar_lea.vmem %s41_s16, 2048  ;;  %p566_p12 = scmp.lt.s32.totalorder %s41_s16, %s41_s16 }
  0x1b   :  { %p562_p11 = scmp.ne.s32.totalorder %s41_s16, %s561_s24  ;;  %p567_p13 = scmp.lt.s32.totalorder %s561_s24, %s561_s24 }
  0x1d   :  { %p568_p0 = por %p567_p13, %p566_p12 }
  0x1f   :  { %p569_p1 = pnand %p568_p0, %p562_p11 }
  0x21   :  { %572 = shalt.err (!%p569_p1)
}
  0x22   :  { %s605_s1 = smov 128   ;;  %s606_s25 = smov 8  }
  0x23   :  { %46 = dma.hbm_to_vmem [thread:$0]  %s713_s5, 2048, %s41_s16, [#allocation7], %s605_s1, %s605_s1, %s606_s25  }
  0x24   :  { %595 = dma.done.wait [#allocation4], 1024  }
  0x25   :  { %596 = vsyncadd [#allocation4], 4294966272 }
  0x26   :  { %597 = dma.done.wait [#allocation7], 2048  }
  0x27   :  { %598 = vsyncadd [#allocation7], 4294965248  ;;  %v607_v0 = vmov 0.0   ;;  %vm608_vm0 = vmmov 0   ;;  %v488_v1 = vld [vmem:[#allocation3] sm:$0xff]   ;;  %v489_v2 = vld [vmem:[#allocation3 + $0x8] sm:$0xff]  }
  0x28   :  { %458 = vmatprep.subr.bf16.mxu0 %v607_v0  ;;  %474 = vmatprep.mubr.msk.bf16.mxu0 %vm608_vm0, %v607_v0  ;;  %v490_v3 = vld [vmem:[#allocation3 + $0x10] sm:$0xff]   ;;  %v491_v4 = vld [vmem:[#allocation3 + $0x18] sm:$0xff]   ;;  %v492_v5 = vld [vmem:[#allocation3 + $0x20] sm:$0xff]   ;;  %v609_v46 = vmov 0  }
  0x29   :  { %459 = vmatpush3.bf16.msra.mxu0 %v488_v1  ;;  %v493_v6 = vld [vmem:[#allocation3 + $0x28] sm:$0xff]   ;;  %v494_v7 = vld [vmem:[#allocation3 + $0x30] sm:$0xff]   ;;  %v495_v8 = vld [vmem:[#allocation3 + $0x38] sm:$0xff]   ;;  %374 = vmatprep.mubr.bf16.mxu1 %v609_v46 }
  0x2a   :  { %460 = vmatprep.subr.bf16.mxu0 %v607_v0  ;;  %v496_v9 = vld [vmem:[%s708_s0] sm:$0xff]   ;;  %v497_v27 = vld [vmem:[#allocation6 + $0x4] ss:$8 sps:$4 sm:$0xff]   ;;  %v499_v28 = vld [vmem:[#allocation6] ss:$8 sps:$4 sm:$0xff]  }
  0x2b   :  { %v417_v10 = vld [vmem:[%s710_s2] ss:$0 sm:$0xff]  ;;  %v500_v29 = vld [vmem:[#allocation6 + $0x14] ss:$8 sps:$4 sm:$0xff]   ;;  %342 = vmatprep.subr.bf16.mxu1 %v497_v27  ;;  %v503_v39 = vld [vmem:[#allocation6 + $0x24] ss:$8 sps:$4 sm:$0xff]  }
  0x2c   :  { %343 = vmatpush1.bf16.msra.mxu1 %v499_v28  ;;  %v502_v38 = vld [vmem:[#allocation6 + $0x10] ss:$8 sps:$4 sm:$0xff]   ;;  %v505_v40 = vld [vmem:[#allocation6 + $0x20] ss:$8 sps:$4 sm:$0xff]   ;;  %v506_v41 = vld [vmem:[#allocation6 + $0x34] ss:$8 sps:$4 sm:$0xff]  }
  0x2d   :  { %461 = vmatpush3.bf16.msra.mxu0 %v489_v2  ;;  %344 = vmatprep.subr.bf16.mxu1 %v500_v29  ;;  %v508_v42 = vld [vmem:[#allocation6 + $0x30] ss:$8 sps:$4 sm:$0xff]   ;;  %v509_v43 = vld [vmem:[#allocation6 + $0x44] ss:$8 sps:$4 sm:$0xff]   ;;  %v511_v44 = vld [vmem:[#allocation6 + $0x40] ss:$8 sps:$4 sm:$0xff]  }
  0x2e   :  { %462 = vmatprep.subr.bf16.mxu0 %v607_v0  ;;  %v512_v45 = vld [vmem:[#allocation6 + $0x54] ss:$8 sps:$4 sm:$0xff]   ;;  %v514_v47 = vld [vmem:[#allocation6 + $0x50] ss:$8 sps:$4 sm:$0xff]   ;;  %v515_v48 = vld [vmem:[#allocation6 + $0x64] ss:$8 sps:$4 sm:$0xff]  }
  0x2f   :  { %v517_v49 = vld [vmem:[#allocation6 + $0x60] ss:$8 sps:$4 sm:$0xff]   ;;  %v518_v50 = vld [vmem:[#allocation6 + $0x74] ss:$8 sps:$4 sm:$0xff]   ;;  %v520_v51 = vld [vmem:[#allocation6 + $0x70] ss:$8 sps:$4 sm:$0xff]  }
  0x30   :  { %345 = vmatpush1.bf16.msra.mxu1 %v502_v38  ;;  %v427_v60 = vld [vmem:[%s711_s3] ss:$0 sm:$0xff]  ;;  %s610_s3 = smov [#allocation8]  }
  0x31   :  { %463 = vmatpush3.bf16.msra.mxu0 %v490_v3  ;;  %346 = vmatprep.subr.bf16.mxu1 %v503_v39 }
  0x32   :  { %464 = vmatprep.subr.bf16.mxu0 %v607_v0 }
  0x34   :  { %347 = vmatpush1.bf16.msra.mxu1 %v505_v40 }
  0x35   :  { %465 = vmatpush3.bf16.msra.mxu0 %v491_v4  ;;  %348 = vmatprep.subr.bf16.mxu1 %v506_v41 }
  0x36   :  { %466 = vmatprep.subr.bf16.mxu0 %v607_v0 }
  0x38   :  { %349 = vmatpush1.bf16.msra.mxu1 %v508_v42 }
  0x39   :  { %467 = vmatpush3.bf16.msra.mxu0 %v492_v5  ;;  %350 = vmatprep.subr.bf16.mxu1 %v509_v43  ;;  %v252_v5 = vlaneseq }
  0x3a   :  { %468 = vmatprep.subr.bf16.mxu0 %v607_v0 }
  0x3c   :  { %351 = vmatpush1.bf16.msra.mxu1 %v511_v44 }
  0x3d   :  { %469 = vmatpush3.bf16.msra.mxu0 %v493_v6  ;;  %352 = vmatprep.subr.bf16.mxu1 %v512_v45  ;;  %v253_v6 = vshrl.u32 %v252_v5, 7 }
  0x3e   :  { %470 = vmatprep.subr.bf16.mxu0 %v607_v0 }
  0x40   :  { %353 = vmatpush1.bf16.msra.mxu1 %v514_v47 }
  0x41   :  { %471 = vmatpush3.bf16.msra.mxu0 %v494_v7  ;;  %354 = vmatprep.subr.bf16.mxu1 %v515_v48  ;;  %v254_v7 = vsub.s32 0, %v253_v6 }
  0x42   :  { %472 = vmatprep.subr.bf16.mxu0 %v607_v0  ;;  %v428_v0 = vld [vmem:[%s712_s4] ss:$0 sm:$0xff]  ;;  %s404_s4 = sshll.u32 %s610_s3, 4  ;;  %s405_s4 = int_to_ptr.vmem [resolvable:$true] %s404_s4 }
  0x43   :  { %s573_s12 = scalar_lea.vmem %s405_s4, 256  ;;  %p578_p3 = scmp.lt.s32.totalorder %s405_s4, %s405_s4 }
  0x44   :  { %355 = vmatpush1.bf16.msra.mxu1 %v517_v49  ;;  %p574_p2 = scmp.ne.s32.totalorder %s405_s4, %s573_s12  ;;  %p579_p4 = scmp.lt.s32.totalorder %s573_s12, %s573_s12 }
  0x45   :  { %473 = vmatpush3.bf16.msra.mxu0 %v495_v8  ;;  %356 = vmatprep.subr.bf16.mxu1 %v518_v50  ;;  %v250_v8 = vld [vmem:[%s714_s6] sm:$0x3] }
  0x46   :  { %p580_p5 = por %p579_p4, %p578_p3 }
  0x48   :  { %475 = vmatmul.mubr.bf16.vlgmr.msra.gmra.mrb[0].mxu0 %v496_v9  ;;  %357 = vmatpush1.bf16.msra.mxu1 %v520_v51  ;;  %v258_v9 = vsub.s32 1, %v253_v6  ;;  %p581_p6 = pnand %p580_p5, %p574_p2 }
 0x11b   :  { %v173_v11 = vpop.f32.mrb[0].mxu0 }
 0x11c   :  { %v174_v12 = vadd.f32 %v417_v10, %v173_v11  ;;  %v476_v13 = vpop.f32.mrb[1].mxu0  ;;  %v259_v11 = vrot.slane %v250_v8, %v258_v9 }
 0x11d   :  { %v176_v14 = vpop.f32.mrb[2].mxu0 }
 0x11e   :  { %v182_v15 = vmul.f32 0.70710677, %v174_v12  ;;  %v177_v16 = vadd.f32 %v417_v10, %v176_v14  ;;  %v477_v17 = vpop.f32.mrb[3].mxu0  ;;  %v180_v20 = vmul.f32 0.5, %v174_v12  ;;  %v255_v10 = vrot.slane %v250_v8, %v254_v7 }
 0x120   :  { %521 = verf.f32 %v182_v15  ;;  %v183_v18 = vmul.f32 0.70710677, %v177_v16  ;;  %v181_v25 = vmul.f32 0.5, %v177_v16 }
 0x122   :  { %523 = verf.f32 %v183_v18 }
 0x12a   :  { %v522_v19 = vpop.eup %521 }
 0x12b   :  { %v186_v21 = vadd.f32 1.0, %v522_v19 }
 0x12c   :  { %v524_v22 = vpop.eup %523 }
 0x12d   :  { %v188_v23 = vmul.f32 %v186_v21, %v180_v20  ;;  %v187_v24 = vadd.f32 1.0, %v524_v22 }
 0x12f   :  { %190 = vadd.xlane.f32.xlu0 %v188_v23  ;;  %v189_v26 = vmul.f32 %v187_v24, %v181_v25 }
 0x133   :  { %192 = vadd.xlane.f32.xlu0 %v189_v26 }
 0x1bc   :  { %v191_v30 = vpop.xlane.xlu0 %190 }
 0x1bd   :  { %v195_v31 = vmul.f32 0.0078125, %v191_v30 }
 0x1bf   :  { %v197_v32 = vsub.f32 %v188_v23, %v195_v31 }
 0x1c0   :  { %v193_v33 = vpop.xlane.xlu0 %192 }
 0x1c1   :  { %v196_v34 = vmul.f32 0.0078125, %v193_v33  ;;  %v199_v35 = vmul.f32 %v197_v32, %v197_v32 }
 0x1c3   :  { %v198_v36 = vsub.f32 %v189_v26, %v196_v34  ;;  %201 = vadd.xlane.f32.xlu1 %v199_v35 }
 0x1c5   :  { %v200_v37 = vmul.f32 %v198_v36, %v198_v36 }
 0x1c7   :  { %203 = vadd.xlane.f32.xlu1 %v200_v37 }
 0x250   :  { %v202_v52 = vpop.xlane.xlu1 %201 }
 0x251   :  { %v205_v53 = vmul.f32 0.0078125, %v202_v52 }
 0x253   :  { %v207_v54 = vadd.f32 1e-12, %v205_v53 }
 0x254   :  { %v204_v55 = vpop.xlane.xlu1 %203 }
 0x255   :  { %525 = vrsqrt.f32 %v207_v54  ;;  %v206_v56 = vmul.f32 0.0078125, %v204_v55 }
 0x257   :  { %v208_v57 = vadd.f32 1e-12, %v206_v56 }
 0x259   :  { %527 = vrsqrt.f32 %v208_v57 }
 0x25f   :  { %v526_v58 = vpop.eup %525 }
 0x260   :  { %v211_v59 = vmul.f32 %v526_v58, %v197_v32 }
 0x262   :  { %v220_v63 = vmul.f32 %v427_v60, %v211_v59 }
 0x263   :  { %v528_v61 = vpop.eup %527 }
 0x264   :  { %v212_v62 = vmul.f32 %v528_v61, %v198_v36  ;;  %v229_v2 = vadd.f32 %v428_v0, %v220_v63 }
 0x266   :  { %v221_v1 = vmul.f32 %v427_v60, %v212_v62 }
 0x268   :  { %v230_v3 = vadd.f32 %v428_v0, %v221_v1 }
 0x26a   :  { %v231_v4 = vpack.c.bf16 %v230_v3, %v229_v2 }
 0x26c   :  { %375 = vmatmul.mubr.bf16.vlgmr.msra.gmra.mrb[0].mxu1 %v231_v4 }
 0x33f   :  { %v376_v12 = vpop.f32.mrb[0].mxu1 }
 0x340   :  { %v377_v13 = vadd.f32 %v376_v12, %v255_v10  ;;  %v378_v14 = vpop.f32.mrb[1].mxu1 }
 0x341   :  { %v379_v15 = vadd.f32 %v378_v14, %v259_v11  ;;  %v380_v16 = vpop.f32.mrb[2].mxu1 }
 0x342   :  { %v381_v17 = vadd.f32 %v380_v16, %v255_v10  ;;  %v382_v18 = vpop.f32.mrb[3].mxu1 }
 0x343   :  { %v447_v19 = vpack.c.bf16 %v379_v15, %v377_v13  ;;  %v383_v20 = vadd.f32 %v382_v18, %v259_v11 }
 0x345   :  { %397 = vst [vmem:[#allocation8] sm:$0xff] %v447_v19  ;;  %v448_v21 = vpack.c.bf16 %v383_v20, %v381_v17 }
 0x347   :  { %398 = vst [vmem:[#allocation8 + $0x8] sm:$0xff] %v448_v21 }
 0x348   :  { %584 = shalt.err (!%p581_p6)
}
 0x349   :  { %s585_s14 = scalar_lea.hbm %s715_s7, 256 }
 0x34a   :  { %p586_p7 = scmp.ne.s32.totalorder %s715_s7, %s585_s14  ;;  %p589_p8 = scmp.lt.u32.totalorder %s585_s14, %s715_s7 }
 0x34c   :  { %p591_p9 = pnand %p589_p8, %p586_p7 }
 0x34e   :  { %594 = shalt.err (!%p591_p9)
}
 0x34f   :  { %410 = dma.vmem_to_hbm [thread:$0]  %s405_s4, 256, %s715_s7, [#allocation5], %s605_s1, %s605_s1, %s606_s25  }
 0x350   :  { %599 = dma.done.wait [#allocation5], 256  }
 0x351   :  { %600 = vsyncadd [#allocation5], 4294967040 }
 0x352   :  { %414 = vsyncpa [#allocation4], 1 }
 0x353   :  { %415 = vsyncpa [#allocation7], 1 }
 0x354   :  { %416 = vsyncpa [#allocation5], 1 }

</bundles_post_ra>
